<compile_context>
chip_gen: v5e
topology: v5e:2x2
jax: 0.10.0
libtpu: 0.0.40
codegen_flags: <defaults>
</compile_context>

<pallas_src>
import jax
import jax.numpy as jnp
from jax.experimental import pallas as pl
from jax.experimental.pallas import tpu as pltpu

_LANE = 128
_SUBLANE = 8
_BLOCK_BYTES = 2 * 1024 * 1024  # per-block VMEM target (double-buffered in+out ~8 MiB)


def _affine_kernel(scale_ref, shift_ref, x_ref, o_ref):
    # scale/shift: (c_tile, 1) per-channel vectors; x/o: (c_tile, hw_tile).
    o_ref[...] = scale_ref[...] * x_ref[...] + shift_ref[...]


def _shift_kernel(shift_ref, x_ref, o_ref):
    o_ref[...] = x_ref[...] + shift_ref[...]


def _pick_tiles(C, HW, itemsize):
    """Pick (c_tile, hw_tile) giving ~_BLOCK_BYTES lane-dense blocks."""
    # Channel tile: full C if small enough, else a multiple of 8.
    c_budget = max(_SUBLANE,
                   (_BLOCK_BYTES // (_LANE * itemsize)) // _SUBLANE * _SUBLANE)
    c_tile = C if C <= c_budget else c_budget
    # Spatial tile: full HW if it fits (always a legal block dim), else a
    # multiple of 128 (ragged last block handled by Pallas masking).
    hw_budget = max(_LANE,
                    (_BLOCK_BYTES // (c_tile * itemsize)) // _LANE * _LANE)
    hw_tile = HW if HW <= hw_budget else hw_budget
    return c_tile, hw_tile


def feature_wise_affine(x, noise_embed, weight, bias, use_affine_level=False):
    """Pallas equivalent of FeatureWiseAffine.forward(x, noise_embed)."""
    B, C, H, W = x.shape
    out_dim = weight.shape[0]
    assert out_dim == C * (2 if use_affine_level else 1)
    HW = H * W
    itemsize = jnp.dtype(x.dtype).itemsize

    # Tiny Linear, hoisted out of the memory-bound kernel (same op order as the
    # PyTorch reference: noise_embed @ W.T + b).
    lin = noise_embed @ weight.T + bias            # (B, out_dim), f32
    x3 = x.reshape(B, C, HW)                       # (B, C, HW), no copy

    c_tile, hw_tile = _pick_tiles(C, HW, itemsize)
    grid = (B, pl.cdiv(C, c_tile), pl.cdiv(HW, hw_tile))

    vec_spec = pl.BlockSpec((None, c_tile, 1), lambda b, ci, si: (b, ci, 0))
    x_spec = pl.BlockSpec((None, c_tile, hw_tile), lambda b, ci, si: (b, ci, si))

    cp = pltpu.CompilerParams(
        dimension_semantics=("parallel", "parallel", "parallel"),
        vmem_limit_bytes=32 * 1024 * 1024)

    if use_affine_level:
        gamma, beta = jnp.split(lin, 2, axis=1)
        scale = (1.0 + gamma).astype(x.dtype).reshape(B, C, 1)
        shift = beta.astype(x.dtype).reshape(B, C, 1)
        out = pl.pallas_call(
            _affine_kernel,
            out_shape=jax.ShapeDtypeStruct((B, C, HW), x.dtype),
            grid=grid,
            in_specs=[vec_spec, vec_spec, x_spec],
            out_specs=x_spec,
            compiler_params=cp,
        )(scale, shift, x3)
    else:
        shift = lin.astype(x.dtype).reshape(B, C, 1)
        out = pl.pallas_call(
            _shift_kernel,
            out_shape=jax.ShapeDtypeStruct((B, C, HW), x.dtype),
            grid=grid,
            in_specs=[vec_spec, x_spec],
            out_specs=x_spec,
            compiler_params=cp,
        )(shift, x3)

    return out.reshape(B, C, H, W)


def _reference(x, noise_embed, weight, bias, use_affine_level):
    B = x.shape[0]
    lin = noise_embed @ weight.T + bias
    lin = lin.reshape(B, -1, 1, 1)
    if use_affine_level:
        gamma, beta = jnp.split(lin, 2, axis=1)
        return (1.0 + gamma) * x + beta
    return x + lin


if __name__ == "__main__":
    key = jax.random.PRNGKey(0)
    ok = True
    # Second shape exercises the non-128-aligned spatial path (H*W = 100,
    # full-extent block, no wrapper padding) and a full-8-sublane channel count.
    for (B, C, H, W) in [(2, 4, 16, 16), (1, 8, 10, 10)]:
        in_ch = 32
        kx, kn, kw0, kb0, kw1, kb1, key = jax.random.split(key, 7)
        x = jax.random.normal(kx, (B, C, H, W), dtype=jnp.float32)
        noise_embed = jax.random.normal(kn, (B, in_ch), dtype=jnp.float32)

        for use_affine in (False, True):
            out_dim = C * (2 if use_affine else 1)
            kw, kb = (kw1, kb1) if use_affine else (kw0, kb0)
            bound = 1.0 / (in_ch ** 0.5)
            weight = jax.random.uniform(kw, (out_dim, in_ch), jnp.float32,
                                        -bound, bound)
            bias = jax.random.uniform(kb, (out_dim,), jnp.float32,
                                      -bound, bound)

            y = feature_wise_affine(x, noise_embed, weight, bias, use_affine)
            y = jax.block_until_ready(y)
            y_ref = _reference(x, noise_embed, weight, bias, use_affine)
            ok &= bool(jnp.allclose(y, y_ref, rtol=1e-5, atol=1e-5))

    print("KERNEL_OK" if ok else "KERNEL_MISMATCH")
</pallas_src>

<mosaic_0001>
module attributes {stable_mosaic.version = 11 : i64} {
  func.func @_shift_kernel(%arg0: i32, %arg1: i32, %arg2: i32, %arg3: memref<1x4x1xf32, #tpu.memory_space<vmem>>, %arg4: memref<1x4x256xf32, #tpu.memory_space<vmem>>, %arg5: memref<1x4x256xf32, #tpu.memory_space<vmem>>) attributes {dimension_semantics = [#tpu.dimension_semantics<parallel>, #tpu.dimension_semantics<parallel>, #tpu.dimension_semantics<parallel>], iteration_bounds = array<i64: 2, 1, 1>, scalar_prefetch = 0 : i64, scratch_operands = 0 : i64, tpu.core_type = #tpu.core_type<tc>, window_params = [{transform_indices = @transform_0, window_bounds = array<i64: 1, 4, 1>}, {transform_indices = @transform_1, window_bounds = array<i64: 1, 4, 256>}, {transform_indices = @transform_2, window_bounds = array<i64: 1, 4, 256>}]} {
    %c0 = arith.constant 0 : index
    %c0_0 = arith.constant 0 : index
    %c0_1 = arith.constant 0 : index
    %0 = vector.load %arg4[%c0, %c0_0, %c0_1] : memref<1x4x256xf32, #tpu.memory_space<vmem>>, vector<1x4x256xf32>
    %1 = vector.shape_cast %0 : vector<1x4x256xf32> to vector<4x256xf32>
    %c0_2 = arith.constant 0 : index
    %c0_3 = arith.constant 0 : index
    %c0_4 = arith.constant 0 : index
    %2 = vector.load %arg3[%c0_2, %c0_3, %c0_4] : memref<1x4x1xf32, #tpu.memory_space<vmem>>, vector<1x4x1xf32>
    %3 = vector.shape_cast %2 : vector<1x4x1xf32> to vector<4x1xf32>
    %4 = vector.broadcast %3 : vector<4x1xf32> to vector<4x256xf32>
    %5 = arith.addf %1, %4 : vector<4x256xf32>
    %c0_5 = arith.constant 0 : index
    %c0_6 = arith.constant 0 : index
    %c0_7 = arith.constant 0 : index
    %6 = vector.load %arg5[%c0_5, %c0_6, %c0_7] : memref<1x4x256xf32, #tpu.memory_space<vmem>>, vector<1x4x256xf32>
    %7 = vector.shape_cast %6 : vector<1x4x256xf32> to vector<4x256xf32>
    %8 = vector.shape_cast %5 : vector<4x256xf32> to vector<1x4x256xf32>
    tpu.vector_store %arg5[%c0_5, %c0_6, %c0_7], %8 {strides = array<i32>} : memref<1x4x256xf32, #tpu.memory_space<vmem>>, vector<1x4x256xf32>,
    return
  }
  func.func @transform_0(%arg0: i32, %arg1: i32, %arg2: i32) -> (i32, i32, i32) {
    %c0_i32 = arith.constant 0 : i32
    %c0_i32_0 = arith.constant 0 : i32
    return %arg0, %arg1, %c0_i32 : i32, i32, i32
  }
  func.func @transform_1(%arg0: i32, %arg1: i32, %arg2: i32) -> (i32, i32, i32) {
    %c0_i32 = arith.constant 0 : i32
    return %arg0, %arg1, %arg2 : i32, i32, i32
  }
  func.func @transform_2(%arg0: i32, %arg1: i32, %arg2: i32) -> (i32, i32, i32) {
    %c0_i32 = arith.constant 0 : i32
    return %arg0, %arg1, %arg2 : i32, i32, i32
  }
}

</mosaic_0001>

<bundles_post_ra>
// kernel: tpu_custom_call.1
= control target key start
LH: loop header
LB: loop body
LE: loop exit
PB: predicated region body
PF: predicated region fallthrough
CT: control target
= control target key end

     0   :  { %7 = vsyncpa [#allocation3], 0  ;;  %s702_s0 = inlined_call_operand.vmem [shape: f32[2,4,1], index: 0, kind: input, shape index: {}]   ;;  %s703_s1 = inlined_call_operand.hbm [shape: f32[2,4,256], index: 1, kind: input, shape index: {}]   ;;  %s704_s2 = inlined_call_operand.hbm [shape: f32[2,4,256], index: 2, kind: output, shape index: {}]  }
   0x1   :  { %9 = vsyncpa [#allocation3 + $0x1], 0 }
   0x2   :  { %10 = vsyncpa [#allocation4], 0 }
   0x3   :  { %12 = vsyncpa [#allocation4 + $0x1], 0  ;;  %s577_s9 = smov 0   ;;  %s579_s10 = smov 0  }
   0x4   :  { %s581_s11 = smov 0   ;;  %s583_s12 = smov 0  }
   0x5   :  { %s585_s13 = smov 0   ;;  %s587_s14 = smov 0  }
   0x6 LB: > { %s363_s15 = sadd.s32 4294967295, %s558_s14   ;;  %s364_s16 = sadd.s32 4294967294, %s558_s14   ;;  %s558_s14 = sphi %s587_s14, %s18_s14   ;;  %s554_s13 = sphi %s585_s13, %s713_s13   ;;  %s550_s12 = sphi %s583_s12, %s712_s12   ;;  %s546_s11 = sphi %s581_s11, %s711_s11   ;;  %s542_s10 = sphi %s579_s10, %s710_s10   ;;  %s538_s9 = sphi %s577_s9, %s709_s9  }
   0x7   : > { %s37_s17 = sadd.s32 1, %s554_s13  ;;  %s76_s18 = sadd.s32 1, %s546_s11 }
   0x8   : > { %p39_p0 = scmp.ge.s32.totalorder %s37_s17, 2  ;;  %p83_p1 = scmp.ne.s32.totalorder %s546_s11, %s542_s10 }
   0x9   : > { %p84_p2 = scmp.eq.s32.totalorder %s558_s14, 0  ;;  %p89_p3 = scmp.ne.s32.totalorder %s542_s10, %s538_s9 }
   0xa   : > { %s715_s17 = smov (%p39_p0, %s37_s17), 0  ;;  %p90_p5 = scmp.eq.s32.totalorder %s363_s15, 0 }
   0xb   : > { %p618_p4 = por %p84_p2, %p83_p1  ;;  %s69_s20 = ssub.s32 %s554_s13, %s715_s17 }
   0xc   : > { %p117_p6 = scmp.eq.s32.totalorder %s363_s15, 1  ;;  %p74_p7 = scmp.eq.s32.totalorder %s69_s20, 0 }
   0xd   : > { %p624_p8 = por %p90_p5, %p89_p3  ;;  %p123_p10 = scmp.eq.s32.totalorder %s364_s16, 1 }
   0xe   : > { %p628_p9 = por %p117_p6, %p83_p1  ;;  %p366_p12 = scmp.ge.s32.totalorder %s558_s14, 2 }
   0xf   : > { %s633_s23 = scalar_select %p74_p7, %s546_s11, %s76_s18  }
  0x10   : > { %p635_p11 = por %p123_p10, %p89_p3  ;;  %p393_p13 = scmp.lt.s32.totalorder %s558_s14, 2 }
  0x11   : > { %s153_s25 = sand.u32 1, %s546_s11   ;;  %s379_s27 = sshll.u32 %s554_s13, 3 }
  0x12   : > { %s367_s26 = sshll.u32 %s153_s25, 3  ;;  %s166_s30 = scalar_lea.hbm %s703_s1, %s379_s27 }
  0x13   : > { %s157_s3 = scalar_lea.vmem [#allocation2], %s367_s26  ;;  %s168_s5 = sshll.u32 %s166_s30, 4  ;;  %s169_s5 = int_to_ptr.hbm [resolvable:$true] %s168_s5 }
  0x14   : > { %s170_s4 = sshll.u32 %s157_s3, 4  ;;  %p386_p0 = pnand %p393_p13, %p618_p4  ;;  %s171_s4 = int_to_ptr.vmem [resolvable:$true] %s170_s4 }
  0x15   : > { %p370_p1 = scmp.ge.s32.totalorder %s558_s14, 1  ;;  %p175_p2 = scmp.lt.s32.totalorder %s558_s14, 3 }
  0x16   : > { %s154_s6 = scalar_lea.sflag [#allocation3], %s153_s25 }
  0x17   : > { %388 = dma.hbm_to_vmem [thread:$0]  (!%p386_p0), %s169_s5, 128, %s171_s4, %s154_s6  }
  0x18   : > { %p176_p3 = pnand %p370_p1, %p175_p2 }
  0x19   : > { %s651_s7 = sand.u32 (!%p176_p3), 1, %s542_s10  }
  0x1a   : > { %179 = sbr.rel (%p176_p3) target bundleno = 161 (0xa1), region = 28  ;;  %s371_s8 = sshll.u32 (!%p176_p3), %s651_s7, 3 }
  0x1b   : > { %s182_s15 = scalar_lea.sflag (!%p176_p3), [#allocation3], %s651_s7  ;;  %s185_s16 = scalar_lea.vmem (!%p176_p3), [#allocation2], %s371_s8 }
  0x1f   : > { %529 = dma.done.wait (%p624_p8), %s182_s15, 128  }
  0x20   : > { %531 = vsyncadd (%p624_p8), %s182_s15, 4294967168  ;;  %p214_p4 = scmp.lt.s32.totalorder %s550_s12, 1  ;;  %v560_v0 = vmov 0   ;;  %v561_v2 = vmov 839922192   ;;  %s380_s27 = sshll.u32 %s550_s12, 3 }
  0x21   : > { %445 = vset.pattern.permute.xlu0 %v560_v0  ;;  %v230_v3 = vunpack.c.l.s4 %v561_v2  ;;  %s252_s29 = scalar_lea.hbm %s704_s2, %s380_s27  ;;  %v223_v6 = vld [vmem:[%s185_s16] sm:$0xff]  ;;  %s213_s30 = scalar_lea.vmem [#allocation5], %s371_s8 }
  0x22   : > { %s215_s18 = scalar_select %p214_p4, %s550_s12, 1 }
  0x23   : > { %v231_v4 = vunpack.c.0.s8 %v230_v3  ;;  %s254_s3 = sshll.u32 %s213_s30, 4  ;;  %s256_s4 = sshll.u32 %s252_s29, 4  ;;  %s255_s3 = int_to_ptr.vmem [resolvable:$true] %s254_s3  ;;  %s257_s4 = int_to_ptr.hbm [resolvable:$true] %s256_s4 }
  0x24   : > { %s373_s19 = sshll.u32 %s215_s18, 2  ;;  %s237_s5 = scalar_lea.sflag [#allocation4], %s651_s7 }
  0x25   : > { %s220_s26 = scalar_lea.vmem %s702_s0, %s373_s19  ;;  %s490_s6 = sshra.s32 %s257_s4, 4  ;;  %s491_s6 = int_to_ptr.hbm [resolvable:$true] %s490_s6 }
  0x26   : > { %v224_v1 = vld [vmem:[%s220_s26] sm:$0xf]  ;;  %s492_s12 = scalar_lea.hbm %s491_s6, 8  ;;  %s496_s16 = scalar_lea.hbm %s704_s2, 16 }
  0x27   : > { %227 = vperm.xlu0 %445, %v224_v1   ;;  %p493_p5 = scmp.ne.s32.totalorder %s491_s6, %s492_s12  ;;  %p497_p8 = scmp.lt.s32.totalorder %s491_s6, %s704_s2 }
  0x28   : > { %p498_p10 = scmp.lt.s32.totalorder %s496_s16, %s492_s12 }
  0x29   : > { %p494_p6 = pnand %p493_p5, %p628_p9 }
  0x2a   : > { %p499_p13 = por %p498_p10, %p497_p8 }
  0x2b   : > { %p495_p7 = pneg %p494_p6 }
  0x2d   : > { %p500_p0 = pnand %p499_p13, %p495_p7 }
  0x99   : > { %v228_v5 = vpop.permute.xlu0 %227 }
  0x9a   : > { %v232_v7 = vperm.slane %v228_v5, %v231_v4 }
  0x9c   : > { %v234_v8 = vadd.f32 %v232_v7, %v223_v6 }
  0x9e   : > { %235 = vst [vmem:[%s213_s30] sm:$0xff] %v234_v8 }
  0x9f   : > { %503 = shalt.err (!%p500_p0)
}
  0xa0   : > { %383 = dma.vmem_to_hbm [thread:$0]  (%p628_p9), %s255_s3, 128, %s257_s4, %s237_s5  }
  0xa1 PF: > { %s268_s7 = sand.u32 1, %s538_s9   ;;  %p390_p1 = pnand %p366_p12, %p635_p11 }
  0xa2   : > { %s269_s20 = scalar_lea.sflag [#allocation4], %s268_s7 }
  0xa3   : > { %p391_p2 = pneg %p390_p1 }
  0xa5   : > { %533 = dma.done.wait (%p391_p2), %s269_s20, 128  }
  0xa6   : > { %535 = vsyncadd (%p391_p2), %s269_s20, 4294967168  ;;  %s18_s14 = sadd.s32 1, %s558_s14   ;;  %s709_s9 = smov %s542_s10 }
  0xa7   : > { %p15_p3 = scmp.ge.s32.totalorder %s18_s14, 4   ;;  %s710_s10 = smov %s546_s11 }
  0xa8   : > { %s711_s11 = smov %s633_s23  ;;  %s712_s12 = smov %s554_s13 }
  0xa9   : > { %s713_s13 = smov %s715_s17  ;;  %17 = sbr.rel (!%p15_p3) target bundleno = 6 (0x6), region = 76 }
  0xae   :  { %275 = vsyncpa [#allocation3], 1 }
  0xaf   :  { %277 = vsyncpa [#allocation3 + $0x1], 1 }
  0xb0   :  { %278 = vsyncpa [#allocation4], 1 }
  0xb1   :  { %280 = vsyncpa [#allocation4 + $0x1], 1 }

</bundles_post_ra>
